<compile_context>
chip_gen: v5e
topology: v5e:2x2
jax: 0.10.0
libtpu: 0.0.40
codegen_flags: <defaults>
</compile_context>

<pallas_src>
import functools

import jax
import jax.numpy as jnp
from jax.experimental import pallas as pl
from jax.experimental.pallas import tpu as pltpu


def _ffn_kernel(x_ref, w13_ref, w2_ref, o_ref, acc_ref):
    # x_ref  : (tm, dim)     token tile, resident across the hidden axis
    # w13_ref: (dim, 2*th)   packed [W1 | W3] hidden slice (contiguous HBM slab)
    # w2_ref : (th, dim)     hidden slice of W2 (contiguous rows)
    # o_ref  : (tm, dim)     output tile (written on the last hidden step)
    # acc_ref: (tm, dim)     f32 accumulator scratch
    h = pl.program_id(1)
    th = w2_ref.shape[0]

    @pl.when(h == 0)
    def _():
        acc_ref[...] = jnp.zeros_like(acc_ref)

    x = x_ref[...]  # native dtype -> MXU directly (no f32 upcast)
    # One fused gate matmul: N = 2*th, then split (th is a multiple of 128 or
    # the full hidden dim, so the split lands on tile boundaries).
    h13 = jnp.dot(x, w13_ref[...], preferred_element_type=jnp.float32)
    h1 = h13[:, :th]
    h3 = h13[:, th:]

    # SiLU gating kept in f32 for precision; downcast only for the second dot.
    gated = (h1 * jax.nn.sigmoid(h1)) * h3
    acc_ref[...] += jnp.dot(gated.astype(w2_ref.dtype), w2_ref[...],
                            preferred_element_type=jnp.float32)

    @pl.when(h == pl.num_programs(1) - 1)
    def _():
        o_ref[...] = acc_ref[...].astype(o_ref.dtype)


_TPU_DEFAULTS = None


def _tpu_defaults():
    """(tm, th, vmem_limit_bytes, split_small_m).

    Conservative fallback is v7x-safe (64 MiB physical VMEM per TensorCore).
    """
    global _TPU_DEFAULTS
    if _TPU_DEFAULTS is None:
        # v7x-ish: 64 MiB VMEM, 2 TensorCores -> tm=768/th=256, ~52 MiB limit.
        tm, th, vmem, split = 768, 256, 52 * 1024 * 1024, True
        try:
            cap = pltpu.get_tpu_info().vmem_capacity_bytes
            if cap >= 100 * 1024 * 1024:
                # v5e / v6e: 128 MiB VMEM, single TensorCore per chip.
                tm, th, vmem, split = 1024, 512, 96 * 1024 * 1024, False
        except Exception:
            # Unknown hardware: keep conservative tiles, but don't split small
            # batches (splitting doubles weight streaming on single-TC chips).
            split = False
        _TPU_DEFAULTS = (tm, th, vmem, split)
    return _TPU_DEFAULTS


def _pick_hidden_tile(hidden, target):
    """Largest multiple of 128 that divides `hidden` and is <= target, else full."""
    if hidden <= target:
        return hidden
    t = (target // 128) * 128
    while t >= 128:
        if hidden % t == 0:
            return t
        t -= 128
    return hidden


def _vmem_usage_bytes(tm, th, dim, act_itemsize, w_itemsize):
    """Rough VMEM footprint: double-buffered tiles + f32 accumulator."""
    x_tiles = 2 * tm * dim * act_itemsize
    out_tiles = 2 * tm * dim * act_itemsize
    acc = tm * dim * 4
    w13_tiles = 2 * dim * (2 * th) * w_itemsize
    w2_tiles = 2 * th * dim * w_itemsize
    return x_tiles + out_tiles + acc + w13_tiles + w2_tiles


@functools.partial(jax.jit, static_argnames=("block_m", "block_h"))
def feed_forward(x, w1, w2, w3, *, block_m=None, block_h=None):
    """x: (..., dim). w1, w3: (dim, hidden). w2: (hidden, dim)."""
    dim = x.shape[-1]
    hidden = w1.shape[-1]
    lead = x.shape[:-1]
    xf = x.reshape(-1, dim)
    m = xf.shape[0]

    tm_default, th_default, vmem_limit, split_small_m = _tpu_defaults()

    # --- token tile -----------------------------------------------------------
    tm = tm_default if block_m is None else block_m
    tm = min(tm, m)  # tm == m (full) is always a legal block shape

    # v7x megacore: if a medium batch would give the parallel axis a single
    # tile, split it so both TensorCores get work.
    if split_small_m and block_m is None and m > 512 and pl.cdiv(m, tm) < 2:
        half = (m + 1) // 2
        tm = max(256, ((half + 7) // 8) * 8)

    # --- hidden tile ----------------------------------------------------------
    if block_h is None:
        th = _pick_hidden_tile(hidden, th_default)
    else:
        th = min(block_h, hidden)
        if hidden % th != 0:
            # Padding along the reduction axis would corrupt the accumulator.
            th = _pick_hidden_tile(hidden, th)

    # --- make sure the tiles fit the scoped VMEM limit ------------------------
    act_sz = xf.dtype.itemsize
    w_sz = w2.dtype.itemsize
    budget = int(vmem_limit * 0.9)  # leave headroom for compiler scratch/sems
    while _vmem_usage_bytes(tm, th, dim, act_sz, w_sz) > budget and tm > 256:
        tm = max(256, tm - 256)
    while _vmem_usage_bytes(tm, th, dim, act_sz, w_sz) > budget and th > 128:
        new_th = _pick_hidden_tile(hidden, max(128, th // 2))
        if new_th >= th:
            break
        th = new_th

    n_h = hidden // th
    grid = (pl.cdiv(m, tm), n_h)

    # --- pack W1/W3 into one contiguous (n_h, dim, 2*th) stream ---------------
    # In a real model this is a one-time, hoisted transform of the weights.
    w1r = w1.reshape(dim, n_h, th)
    w3r = w3.reshape(dim, n_h, th)
    w13 = jnp.transpose(jnp.concatenate([w1r, w3r], axis=-1), (1, 0, 2))

    # --- advisory cost estimate (weights re-streamed once per token tile) -----
    n_token_tiles = pl.cdiv(m, tm)
    flops = 2 * m * dim * hidden * 3
    transcendentals = m * hidden  # sigmoid in the SiLU gate
    weight_bytes = (w1.size + w3.size + w2.size) * w_sz
    bytes_accessed = (
        xf.size * xf.dtype.itemsize        # x read
        + m * dim * x.dtype.itemsize       # output write
        + weight_bytes * n_token_tiles     # weights streamed per token tile
    )

    out = pl.pallas_call(
        _ffn_kernel,
        out_shape=jax.ShapeDtypeStruct((m, dim), x.dtype),
        grid_spec=pltpu.PrefetchScalarGridSpec(
            num_scalar_prefetch=0,
            grid=grid,
            in_specs=[
                # x: resident across the hidden axis.
                pl.BlockSpec((tm, dim), lambda i, h: (i, 0)),
                # Packed [W1 | W3] hidden slice: contiguous slab per grid step.
                pl.BlockSpec((pl.Squeezed(), dim, 2 * th),
                             lambda i, h: (h, 0, 0)),
                # W2 hidden slice: contiguous rows.
                pl.BlockSpec((th, dim), lambda i, h: (h, 0)),
            ],
            out_specs=pl.BlockSpec((tm, dim), lambda i, h: (i, 0)),
            scratch_shapes=[pltpu.VMEM((tm, dim), jnp.float32)],
        ),
        compiler_params=pltpu.CompilerParams(
            dimension_semantics=("parallel", "arbitrary"),
            vmem_limit_bytes=vmem_limit,
        ),
        cost_estimate=pl.CostEstimate(
            flops=flops,
            transcendentals=transcendentals,
            bytes_accessed=bytes_accessed,
        ),
    )(xf, w13, w2)

    return out.reshape(*lead, dim)


def init_params(key, dim, hidden_dim, dtype=jnp.float32):
    # Deterministic synthetic init (mimics nn.Linear weight shapes, pre-transposed).
    k1, k2, k3 = jax.random.split(key, 3)
    w1 = (jax.random.normal(k1, (dim, hidden_dim), jnp.float32)
          / jnp.sqrt(dim)).astype(dtype)
    w3 = (jax.random.normal(k3, (dim, hidden_dim), jnp.float32)
          / jnp.sqrt(dim)).astype(dtype)
    w2 = (jax.random.normal(k2, (hidden_dim, dim), jnp.float32)
          / jnp.sqrt(hidden_dim)).astype(dtype)
    return w1, w2, w3


def _reference(x, w1, w2, w3):
    # Mirrors the kernel's numerics: f32-accumulated matmuls, SiLU gate in f32,
    # gate downcast to the weight dtype before the second matmul.
    xf = x.astype(jnp.float32)
    h1 = xf @ w1.astype(jnp.float32)
    h3 = xf @ w3.astype(jnp.float32)
    gated = (h1 * jax.nn.sigmoid(h1) * h3).astype(w2.dtype).astype(jnp.float32)
    return (gated @ w2.astype(jnp.float32)).astype(x.dtype)


if __name__ == "__main__":
    # --- Test 1: small f32 shapes matching the module spec ---------------------
    batch, seq, dim, hidden_dim = 2, 8, 32, 64
    key = jax.random.PRNGKey(0)
    kx, kw = jax.random.split(key)
    x = jax.random.normal(kx, (batch, seq, dim), jnp.float32)
    w1, w2, w3 = init_params(kw, dim, hidden_dim, jnp.float32)

    out = jax.block_until_ready(feed_forward(x, w1, w2, w3))
    ref = _reference(x.reshape(-1, dim), w1, w2, w3).reshape(batch, seq, dim)
    assert out.shape == (batch, seq, dim)
    assert jnp.allclose(out.astype(jnp.float32), ref.astype(jnp.float32),
                        atol=2e-4, rtol=2e-4)

    # --- Test 2: bf16, explicit multi-tile grid (token + hidden tiling) --------
    b2, s2, d2, h2 = 2, 64, 128, 256
    kx2, kw2 = jax.random.split(jax.random.PRNGKey(0), 2)
    x2 = jax.random.normal(kx2, (b2, s2, d2), jnp.float32).astype(jnp.bfloat16)
    w1b, w2b, w3b = init_params(kw2, d2, h2, jnp.bfloat16)

    out2 = jax.block_until_ready(
        feed_forward(x2, w1b, w2b, w3b, block_m=64, block_h=128))
    ref2 = _reference(x2.reshape(-1, d2), w1b, w2b, w3b).reshape(b2, s2, d2)
    assert out2.shape == (b2, s2, d2)
    assert jnp.allclose(out2.astype(jnp.float32), ref2.astype(jnp.float32),
                        atol=3e-2, rtol=3e-2)

    # --- Test 3: default (auto) tiles, partial token tile / ragged m -----------
    b3, s3, d3, h3 = 4, 300, 256, 512   # m = 1200 tokens
    kx3, kw3 = jax.random.split(jax.random.PRNGKey(0), 2)
    x3 = jax.random.normal(kx3, (b3, s3, d3), jnp.float32)
    w1c, w2c, w3c = init_params(kw3, d3, h3, jnp.float32)

    out3 = jax.block_until_ready(feed_forward(x3, w1c, w2c, w3c))
    ref3 = _reference(x3.reshape(-1, d3), w1c, w2c, w3c).reshape(b3, s3, d3)
    assert out3.shape == (b3, s3, d3)
    assert jnp.allclose(out3.astype(jnp.float32), ref3.astype(jnp.float32),
                        atol=2e-3, rtol=2e-3)

    print("KERNEL_OK")
</pallas_src>

<mosaic_0001>
module attributes {stable_mosaic.version = 11 : i64} {
  func.func @_ffn_kernel(%arg0: i32, %arg1: i32, %arg2: memref<16x32xf32, #tpu.memory_space<vmem>>, %arg3: memref<1x32x128xf32, #tpu.memory_space<vmem>>, %arg4: memref<64x32xf32, #tpu.memory_space<vmem>>, %arg5: memref<16x32xf32, #tpu.memory_space<vmem>>, %arg6: memref<16x32xf32, #tpu.memory_space<vmem>>) attributes {dimension_semantics = [#tpu.dimension_semantics<parallel>, #tpu.dimension_semantics<arbitrary>], iteration_bounds = array<i64: 1, 1>, scalar_prefetch = 0 : i64, scratch_operands = 1 : i64, tpu.core_type = #tpu.core_type<tc>, window_params = [{transform_indices = @transform_0, window_bounds = array<i64: 16, 32>}, {transform_indices = @transform_1, window_bounds = array<i64: 1, 32, 128>}, {transform_indices = @transform_2, window_bounds = array<i64: 64, 32>}, {transform_indices = @transform_3, window_bounds = array<i64: 16, 32>}]} {
    %c0_i32 = arith.constant 0 : i32
    %0 = arith.cmpi eq, %arg1, %c0_i32 : i32
    %1 = arith.extui %0 : i1 to i32
    %c0_i32_0 = arith.constant 0 : i32
    %2 = arith.cmpi ne, %1, %c0_i32_0 : i32
    scf.if %2 {
      %cst_15 = arith.constant 0.000000e+00 : f32
      %24 = vector.broadcast %cst_15 : f32 to vector<16x32xf32>
      %c0_16 = arith.constant 0 : index
      %c0_17 = arith.constant 0 : index
      %25 = vector.load %arg6[%c0_16, %c0_17] : memref<16x32xf32, #tpu.memory_space<vmem>>, vector<16x32xf32>
      tpu.vector_store %arg6[%c0_16, %c0_17], %24 {strides = array<i32>} : memref<16x32xf32, #tpu.memory_space<vmem>>, vector<16x32xf32>,
    } else {
    }
    %c0 = arith.constant 0 : index
    %c0_1 = arith.constant 0 : index
    %3 = vector.load %arg2[%c0, %c0_1] : memref<16x32xf32, #tpu.memory_space<vmem>>, vector<16x32xf32>
    %c0_2 = arith.constant 0 : index
    %c0_3 = arith.constant 0 : index
    %c0_4 = arith.constant 0 : index
    %4 = vector.load %arg3[%c0_2, %c0_3, %c0_4] : memref<1x32x128xf32, #tpu.memory_space<vmem>>, vector<1x32x128xf32>
    %5 = vector.shape_cast %4 : vector<1x32x128xf32> to vector<32x128xf32>
    %cst = arith.constant dense<0.000000e+00> : vector<16x128xf32>
    %6 = tpu.matmul %3, %5, %cst {dimension_numbers = #tpu.dot_dimension_numbers<[1], [0], [0], [1], [0, 0, 1, 1], [], []>} : vector<16x32xf32>, vector<32x128xf32>, vector<16x128xf32> -> vector<16x128xf32>
    %7 = vector.extract_strided_slice %6 {offsets = [0, 0], sizes = [16, 64], strides = [1, 1]} : vector<16x128xf32> to vector<16x64xf32>
    %8 = vector.extract_strided_slice %6 {offsets = [0, 64], sizes = [16, 64], strides = [1, 1]} : vector<16x128xf32> to vector<16x64xf32>
    %9 = arith.negf %7 : vector<16x64xf32>
    %10 = math.exp %9 : vector<16x64xf32>
    %cst_5 = arith.constant 1.000000e+00 : f32
    %11 = vector.broadcast %cst_5 : f32 to vector<16x64xf32>
    %12 = arith.addf %11, %10 : vector<16x64xf32>
    %13 = arith.divf %11, %12 : vector<16x64xf32>
    %14 = arith.mulf %7, %13 : vector<16x64xf32>
    %15 = arith.mulf %14, %8 : vector<16x64xf32>
    %c0_6 = arith.constant 0 : index
    %c0_7 = arith.constant 0 : index
    %16 = vector.load %arg6[%c0_6, %c0_7] : memref<16x32xf32, #tpu.memory_space<vmem>>, vector<16x32xf32>
    %c0_8 = arith.constant 0 : index
    %c0_9 = arith.constant 0 : index
    %17 = vector.load %arg4[%c0_8, %c0_9] : memref<64x32xf32, #tpu.memory_space<vmem>>, vector<64x32xf32>
    %cst_10 = arith.constant dense<0.000000e+00> : vector<16x32xf32>
    %18 = tpu.matmul %15, %17, %cst_10 {dimension_numbers = #tpu.dot_dimension_numbers<[1], [0], [0], [1], [0, 0, 1, 1], [], []>} : vector<16x64xf32>, vector<64x32xf32>, vector<16x32xf32> -> vector<16x32xf32>
    %19 = arith.addf %16, %18 : vector<16x32xf32>
    %c0_11 = arith.constant 0 : index
    %c0_12 = arith.constant 0 : index
    %20 = vector.load %arg6[%c0_11, %c0_12] : memref<16x32xf32, #tpu.memory_space<vmem>>, vector<16x32xf32>
    tpu.vector_store %arg6[%c0_11, %c0_12], %19 {strides = array<i32>} : memref<16x32xf32, #tpu.memory_space<vmem>>, vector<16x32xf32>,
    %c0_i32_13 = arith.constant 0 : i32
    %21 = arith.cmpi eq, %arg1, %c0_i32_13 : i32
    %22 = arith.extui %21 : i1 to i32
    %c0_i32_14 = arith.constant 0 : i32
    %23 = arith.cmpi ne, %22, %c0_i32_14 : i32
    scf.if %23 {
      %c0_15 = arith.constant 0 : index
      %c0_16 = arith.constant 0 : index
      %24 = vector.load %arg6[%c0_15, %c0_16] : memref<16x32xf32, #tpu.memory_space<vmem>>, vector<16x32xf32>
      %c0_17 = arith.constant 0 : index
      %c0_18 = arith.constant 0 : index
      %25 = vector.load %arg5[%c0_17, %c0_18] : memref<16x32xf32, #tpu.memory_space<vmem>>, vector<16x32xf32>
      tpu.vector_store %arg5[%c0_17, %c0_18], %24 {strides = array<i32>} : memref<16x32xf32, #tpu.memory_space<vmem>>, vector<16x32xf32>,
    } else {
    }
    return
  }
  func.func @transform_0(%arg0: i32, %arg1: i32) -> (i32, i32) {
    %c0_i32 = arith.constant 0 : i32
    %c0_i32_0 = arith.constant 0 : i32
    return %arg0, %c0_i32 : i32, i32
  }
  func.func @transform_1(%arg0: i32, %arg1: i32) -> (i32, i32, i32) {
    %c0_i32 = arith.constant 0 : i32
    %c0_i32_0 = arith.constant 0 : i32
    %c0_i32_1 = arith.constant 0 : i32
    return %arg1, %c0_i32, %c0_i32_0 : i32, i32, i32
  }
  func.func @transform_2(%arg0: i32, %arg1: i32) -> (i32, i32) {
    %c0_i32 = arith.constant 0 : i32
    %c0_i32_0 = arith.constant 0 : i32
    return %arg1, %c0_i32 : i32, i32
  }
  func.func @transform_3(%arg0: i32, %arg1: i32) -> (i32, i32) {
    %c0_i32 = arith.constant 0 : i32
    %c0_i32_0 = arith.constant 0 : i32
    return %arg0, %c0_i32 : i32, i32
  }
}

</mosaic_0001>

<bundles_post_ra>
// kernel: feed_forward.1
= control target key start
LH: loop header
LB: loop body
LE: loop exit
PB: predicated region body
PF: predicated region fallthrough
CT: control target
= control target key end

     0   :  { %s312_s0 = inlined_call_operand.vmem [shape: f32[16,32], index: 0, kind: input, shape index: {}]   ;;  %s313_s1 = inlined_call_operand.vmem [shape: f32[1,32,128], index: 1, kind: input, shape index: {}]   ;;  %s314_s2 = inlined_call_operand.vmem [shape: f32[64,32], index: 2, kind: input, shape index: {}]   ;;  %s315_s3 = inlined_call_operand.hbm [shape: f32[16,32], index: 3, kind: output, shape index: {}]  }
   0x1   :  { %v27_v0 = vld [vmem:[%s313_s1 + $0x18] sm:$0xff]  ;;  %v26_v1 = vld [vmem:[%s313_s1 + $0x10] sm:$0xff]  ;;  %v25_v2 = vld [vmem:[%s313_s1 + $0x8] sm:$0xff] }
   0x2   :  { %47 = vmatpush.msra.mxu0 %v27_v0  ;;  %183 = vmatpush.msra.mxu3 %v27_v0 }
   0x3   :  { %8 = vsyncpa [#allocation4], 0  ;;  %v24_v3 = vld [vmem:[%s313_s1] sm:$0xff]  ;;  %vm19_vm0 = vcmask 261120   ;;  %v23_v5 = vld [vmem:[%s312_s0 + $0x8] sm:$0xff]  ;;  %v235_v24 = vmov 0.0  }
   0x4   :  { %48 = vmatpush.msra.mxu0 %v26_v1  ;;  %184 = vmatpush.msra.mxu3 %v26_v1  ;;  %v22_v4 = vld [vmem:[%s312_s0] sm:$0xff]  ;;  %v117_v6 = vld [vmem:[%s314_s2 + $0x38] sm:$0xff]  ;;  %v116_v7 = vld [vmem:[%s314_s2 + $0x30] sm:$0xff]  ;;  %s234_s0 = smov 64   ;;  %21 = vst.msk [vmem:[#allocation2 + $0x8] sm:$0xff] %vm19_vm0, %v235_v24  ;;  %vm118_vm8 = vcmask 523264  }
   0x5   :  { %187 = vmatpush.msra.mxu2 %v117_v6  ;;  %133 = vmatpush.msra.mxu1 %v117_v6  ;;  %v115_v8 = vld [vmem:[%s314_s2 + $0x28] sm:$0xff]  ;;  %v114_v10 = vld [vmem:[%s314_s2 + $0x20] sm:$0xff]  ;;  %v113_v11 = vld [vmem:[%s314_s2 + $0x18] sm:$0xff]  ;;  %20 = vst.msk [vmem:[#allocation2] sm:$0xff] %vm19_vm0, %v235_v24  ;;  %s165_s15 = sshll.u32 %s315_s3, 4  ;;  %s237_s16 = smov 128   ;;  %s166_s15 = int_to_ptr.hbm [resolvable:$true] %s165_s15 }
   0x6   :  { %49 = vmatpush.msra.mxu0 %v25_v2  ;;  %185 = vmatpush.msra.mxu3 %v25_v2  ;;  %v112_v12 = vld [vmem:[%s314_s2 + $0x10] sm:$0xff]  ;;  %v111_v13 = vld [vmem:[%s314_s2 + $0x8] sm:$0xff]  ;;  %v110_v20 = vld [vmem:[%s314_s2] sm:$0xff]  ;;  %s236_s2 = smov [#allocation3]   ;;  %s238_s17 = smov 8  }
   0x7   :  { %188 = vmatpush.msra.mxu2 %v116_v7  ;;  %134 = vmatpush.msra.mxu1 %v116_v7  ;;  %s163_s12 = sshll.u32 %s236_s2, 4  ;;  %s164_s12 = int_to_ptr.vmem [resolvable:$true] %s163_s12 }
   0x8   :  { %50 = vmatpush.msra.mxu0 %v24_v3  ;;  %186 = vmatpush.msra.mxu3 %v24_v3 }
   0x9   :  { %177 = vmatmul.msk.f32.vlgmr.msra.gmra.mxu0 %vm19_vm0, %v22_v4  ;;  %178 = vmatmul.msk.f32.vlgmr.msra.gmra.mxu3 %vm19_vm0, %v23_v5 }
   0xa   :  { %189 = vmatpush.msra.mxu2 %v115_v8  ;;  %135 = vmatpush.msra.mxu1 %v115_v8 }
   0xb   :  { %v109_v49 = vld [vmem:[#allocation2 + $0x8] sm:$0xff] }
   0xc   :  { %190 = vmatpush.msra.mxu2 %v114_v10  ;;  %136 = vmatpush.msra.mxu1 %v114_v10  ;;  %v108_v51 = vld [vmem:[#allocation2] sm:$0xff] }
   0xe   :  { %191 = vmatpush.msra.mxu2 %v113_v11  ;;  %137 = vmatpush.msra.mxu1 %v113_v11 }
  0x10   :  { %192 = vmatpush.msra.mxu2 %v112_v12  ;;  %138 = vmatpush.msra.mxu1 %v112_v12 }
  0x12   :  { %193 = vmatpush.msra.mxu2 %v111_v13  ;;  %139 = vmatpush.msra.mxu1 %v111_v13 }
  0x14   :  { %194 = vmatpush.msra.mxu2 %v110_v20  ;;  %140 = vmatpush.msra.mxu1 %v110_v20 }
  0x86   :  { %v52_v14 = vpop.f32.mrf.mxu0 }
  0x87   :  { %v179_v16 = vmul.f32 -1.442695, %v52_v14 }
  0x8c   :  { %v55_v9 = vpop.f32.mrf.mxu3 }
  0x8d   :  { %102 = vrot.lane.b32.xlu0 %v55_v9, %s234_s0  ;;  %v180_v15 = vmul.f32 -1.442695, %v55_v9 }
  0x8f   :  { %200 = vpow2.f32 %v180_v15 }
  0x90   :  { %202 = vpow2.f32 %v179_v16 }
  0x95   :  { %100 = vrot.lane.b32.xlu0 %v52_v14, %s234_s0  ;;  %v201_v17 = vpop.eup %200 }
  0x96   :  { %v65_v18 = vadd.f32 1.0, %v201_v17  ;;  %v203_v19 = vpop.eup %202 }
  0x97   :  { %v64_v21 = vadd.f32 1.0, %v203_v19 }
  0x98   :  { %204 = vrcp.f32 %v65_v18  ;;  %v92_v31 = vand.u32 2147483648, %v65_v18  ;;  %vm86_vm2 = vweird.f32 %v65_v18  ;;  %v90_v32 = vand.u32 2147483647, %v65_v18 }
  0x99   :  { %206 = vrcp.f32 %v64_v21  ;;  %vm71_vm4 = vweird.f32 %v64_v21  ;;  %v77_v36 = vand.u32 2147483648, %v64_v21  ;;  %v75_v39 = vand.u32 2147483647, %v64_v21 }
  0x9a   :  { %v93_v35 = vor.u32 1.1754944e-38, %v92_v31  ;;  %vm91_vm6 = vcmp.eq.f32.partialorder %v90_v32, 8.507059e+37 }
  0x9b   :  { %v78_v41 = vor.u32 1.1754944e-38, %v77_v36  ;;  %vm76_vm9 = vcmp.eq.f32.partialorder %v75_v39, 8.507059e+37 }
  0x9e   :  { %v205_v22 = vpop.eup %204 }
  0x9f   :  { %v82_v23 = vmul.f32 %v205_v22, %v65_v18  ;;  %v207_v26 = vpop.eup %206  ;;  %vm87_vm1 = vweird.f32 %v205_v22 }
  0xa0   :  { %v67_v27 = vmul.f32 %v207_v26, %v64_v21  ;;  %vm88_vm3 = vmor %vm86_vm2, %vm87_vm1  ;;  %vm72_vm5 = vweird.f32 %v207_v26 }
  0xa1   :  { %v83_v25 = vsub.f32 1.0, %v82_v23  ;;  %vm73_vm7 = vmor %vm71_vm4, %vm72_vm5 }
  0xa2   :  { %v68_v29 = vsub.f32 1.0, %v67_v27 }
  0xa3   :  { %v84_v28 = vmul.f32 %v205_v22, %v83_v25 }
  0xa4   :  { %v69_v33 = vmul.f32 %v207_v26, %v68_v29 }
  0xa5   :  { %v85_v30 = vadd.f32 %v205_v22, %v84_v28 }
  0xa6   :  { %v70_v38 = vadd.f32 %v207_v26, %v69_v33 }
  0xa7   :  { %v89_v34 = vsel %vm88_vm3, %v205_v22, %v85_v30 }
  0xa8   :  { %v94_v37 = vsel %vm91_vm6, %v93_v35, %v89_v34  ;;  %v74_v43 = vsel %vm73_vm7, %v207_v26, %v70_v38 }
  0xa9   :  { %v97_v40 = vmul.f32 %v94_v37, %v55_v9  ;;  %v79_v45 = vsel %vm76_vm9, %v78_v41, %v74_v43 }
  0xaa   :  { %v96_v46 = vmul.f32 %v79_v45, %v52_v14 }
  0xff   :  { %v103_v42 = vpop.permute.xlu0 %102 }
 0x100   :  { %v107_v44 = vmul.f32 %v103_v42, %v97_v40 }
 0x102   :  { %182 = vmatmul.msk.f32.vlgmr.msra.gmra.mxu2 %vm118_vm8, %v107_v44 }
 0x107   :  { %v101_v47 = vpop.permute.xlu0 %100 }
 0x108   :  { %v106_v48 = vmul.f32 %v101_v47, %v96_v46 }
 0x10a   :  { %181 = vmatmul.msk.f32.vlgmr.msra.gmra.mxu1 %vm118_vm8, %v106_v48 }
 0x185   :  { %v145_v50 = vpop.f32.mrf.mxu2 }
 0x186   :  { %v149_v52 = vadd.f32 %v145_v50, %v109_v49 }
 0x187   :  { %v142_v53 = vpop.f32.mrf.mxu1 }
 0x188   :  { %151 = vst.msk [vmem:[#allocation2 + $0x8] sm:$0xff] %vm19_vm0, %v149_v52  ;;  %v148_v54 = vadd.f32 %v142_v53, %v108_v51 }
 0x18a   :  { %150 = vst.msk [vmem:[#allocation2] sm:$0xff] %vm19_vm0, %v148_v54 }
 0x18f   :  { %v156_v55 = vld [vmem:[#allocation2 + $0x8] sm:$0xff] }
 0x190   :  { %158 = vst.msk [vmem:[#allocation3 + $0x8] sm:$0xff] %vm19_vm0, %v156_v55 }
 0x191   :  { %v155_v56 = vld [vmem:[#allocation2] sm:$0xff] }
 0x192   :  { %157 = vst.msk [vmem:[#allocation3] sm:$0xff] %vm19_vm0, %v155_v56 }
 0x193   :  { %171 = dma.vmem_to_hbm [thread:$0]  %s164_s12, 256, %s166_s15, [#allocation4], %s237_s16, %s237_s16, %s238_s17  }
 0x194   :  { %232 = dma.done.wait [#allocation4], 256  }
 0x195   :  { %233 = vsyncadd [#allocation4], 4294967040 }
 0x196   :  { %176 = vsyncpa [#allocation4], 1 }

</bundles_post_ra>
